<compile_context>
chip_gen: v7x
topology: tpu7x:2x2x1
jax: 0.10.0
libtpu: 0.0.40
codegen_flags: <defaults>
</compile_context>

<pallas_src>
import functools

import jax
import jax.numpy as jnp
from jax.experimental import pallas as pl
from jax.experimental.pallas import tpu as pltpu


def _mlp_kernel(x_ref, w1_ref, b1_ref, w2_ref, b2_ref, w3_ref, b3_ref, o_ref):
    # x_ref: [H, TB] bf16 (batch on lanes). w*: [out, in] bf16. b*: [out, 1] f32.
    x = x_ref[...]

    # Layer 1: dense1 + ReLU   (dropout1 = identity in eval mode)
    h1 = jnp.dot(w1_ref[...], x, preferred_element_type=jnp.float32)
    h1 = jnp.maximum(h1 + b1_ref[...], 0.0)

    # Layer 2: dense2 + ReLU   (dropout2 = identity in eval mode)
    h2 = jnp.dot(w2_ref[...], h1.astype(w2_ref.dtype),
                 preferred_element_type=jnp.float32)
    h2 = jnp.maximum(h2 + b2_ref[...], 0.0)

    # Output layer (no activation)
    out = jnp.dot(w3_ref[...], h2.astype(w3_ref.dtype),
                  preferred_element_type=jnp.float32)
    o_ref[...] = (out + b3_ref[...]).astype(o_ref.dtype)


@functools.partial(jax.jit, static_argnames=("batch_tile",))
def five_o_classifier(x, params, *, batch_tile=128):
    """x: [B, H] float32.  params: w{1,2,3} as [out,in] bf16, b{1,2,3} as [out,1] f32."""
    w1, b1 = params["w1"], params["b1"]
    w2, b2 = params["w2"], params["b2"]
    w3, b3 = params["w3"], params["b3"]

    B, H = x.shape
    L = w3.shape[0]
    TB = batch_tile
    n_tiles = pl.cdiv(B, TB)
    Bp = n_tiles * TB

    # Batch on lanes: present a lane-dense [H, Bp] slab (wrapper-side layout
    # plumbing only). Pad batch up to a multiple of the tile; padded lanes are
    # computed and discarded.
    xt = jnp.transpose(x).astype(w1.dtype)
    if Bp != B:
        xt = jnp.pad(xt, ((0, 0), (0, Bp - B)))

    resident = lambda a: pl.BlockSpec(a.shape, lambda i: (0,) * a.ndim)

    out_t = pl.pallas_call(
        _mlp_kernel,
        out_shape=jax.ShapeDtypeStruct((L, Bp), jnp.float32),
        grid_spec=pltpu.PrefetchScalarGridSpec(
            num_scalar_prefetch=0,
            grid=(n_tiles,),
            in_specs=[
                pl.BlockSpec((H, TB), lambda i: (0, i)),   # activations: tiled over batch
                resident(w1), resident(b1),                # weights/biases: resident in VMEM
                resident(w2), resident(b2),
                resident(w3), resident(b3),
            ],
            out_specs=pl.BlockSpec((L, TB), lambda i: (0, i)),
        ),
        compiler_params=pltpu.CompilerParams(
            dimension_semantics=("parallel",),             # megacore-shard the batch axis (v7x)
            vmem_limit_bytes=32 * 1024 * 1024,             # tiny footprint; fits v7x's 64 MiB easily
        ),
    )(xt, w1, b1, w2, b2, w3, b3)

    return jnp.transpose(out_t)[:B]


def init_params(key, hidden_size, num_labels):
    """Deterministic init mirroring nn.Linear: U(-1/sqrt(fan_in), 1/sqrt(fan_in)).

    Weights stored [out, in] (PyTorch layout) in bf16; biases [out, 1] in f32.
    """
    h2, h4 = hidden_size // 2, hidden_size // 4
    dims = [(hidden_size, h2), (h2, h4), (h4, num_labels)]
    params = {}
    for i, (fan_in, fan_out) in enumerate(dims, start=1):
        key, kw, kb = jax.random.split(key, 3)
        bound = 1.0 / jnp.sqrt(jnp.float32(fan_in))
        w = jax.random.uniform(kw, (fan_out, fan_in), jnp.float32, -bound, bound)
        b = jax.random.uniform(kb, (fan_out, 1), jnp.float32, -bound, bound)
        params[f"w{i}"] = w.astype(jnp.bfloat16)
        params[f"b{i}"] = b
    return params


def reference(x, params):
    """Pure-JAX reference mirroring the kernel's dtype flow (bf16 in, f32 accum)."""
    f32 = jnp.float32
    xq = x.astype(jnp.bfloat16).astype(f32)
    w1 = params["w1"].astype(f32)
    w2 = params["w2"].astype(f32)
    w3 = params["w3"].astype(f32)
    h1 = jnp.maximum(xq @ w1.T + params["b1"].T, 0.0)
    h1 = h1.astype(jnp.bfloat16).astype(f32)
    h2 = jnp.maximum(h1 @ w2.T + params["b2"].T, 0.0)
    h2 = h2.astype(jnp.bfloat16).astype(f32)
    return h2 @ w3.T + params["b3"].T


if __name__ == "__main__":
    key = jax.random.PRNGKey(0)
    # clf_hidden_size=32 -> 16 -> 8 -> 4 labels; batch large enough to exercise
    # the batch grid (2 tiles of 128) and the lane-dense layout.
    B, H, NUM_LABELS = 256, 32, 4

    kx, kp = jax.random.split(key)
    x = jax.random.normal(kx, (B, H), jnp.float32)
    params = init_params(kp, H, NUM_LABELS)

    out = five_o_classifier(x, params)
    out = jax.block_until_ready(out)

    ref = reference(x, params)
    assert out.shape == (B, NUM_LABELS)
    assert jnp.allclose(out, ref, atol=2e-3, rtol=2e-3), "mismatch vs reference"
    print("KERNEL_OK")
</pallas_src>

<mosaic_0001>
module attributes {stable_mosaic.version = 11 : i64} {
  func.func @_mlp_kernel(%arg0: i32, %arg1: memref<32x128xbf16, #tpu.memory_space<vmem>>, %arg2: memref<16x32xbf16, #tpu.memory_space<vmem>>, %arg3: memref<16x1xf32, #tpu.memory_space<vmem>>, %arg4: memref<8x16xbf16, #tpu.memory_space<vmem>>, %arg5: memref<8x1xf32, #tpu.memory_space<vmem>>, %arg6: memref<4x8xbf16, #tpu.memory_space<vmem>>, %arg7: memref<4x1xf32, #tpu.memory_space<vmem>>, %arg8: memref<4x128xf32, #tpu.memory_space<vmem>>) attributes {dimension_semantics = [#tpu.dimension_semantics<parallel>], iteration_bounds = array<i64: 2>, scalar_prefetch = 0 : i64, scratch_operands = 0 : i64, tpu.core_type = #tpu.core_type<tc>, window_params = [{transform_indices = @transform_0, window_bounds = array<i64: 32, 128>}, {pipeline_mode = #tpu.pipeline_mode<synchronous>, transform_indices = @transform_1, window_bounds = array<i64: 16, 32>}, {pipeline_mode = #tpu.pipeline_mode<synchronous>, transform_indices = @transform_2, window_bounds = array<i64: 16, 1>}, {pipeline_mode = #tpu.pipeline_mode<synchronous>, transform_indices = @transform_3, window_bounds = array<i64: 8, 16>}, {pipeline_mode = #tpu.pipeline_mode<synchronous>, transform_indices = @transform_4, window_bounds = array<i64: 8, 1>}, {pipeline_mode = #tpu.pipeline_mode<synchronous>, transform_indices = @transform_5, window_bounds = array<i64: 4, 8>}, {pipeline_mode = #tpu.pipeline_mode<synchronous>, transform_indices = @transform_6, window_bounds = array<i64: 4, 1>}, {transform_indices = @transform_7, window_bounds = array<i64: 4, 128>}]} {
    %c0 = arith.constant 0 : index
    %c0_0 = arith.constant 0 : index
    %0 = vector.load %arg1[%c0, %c0_0] : memref<32x128xbf16, #tpu.memory_space<vmem>>, vector<32x128xbf16>
    %c0_1 = arith.constant 0 : index
    %c0_2 = arith.constant 0 : index
    %1 = vector.load %arg2[%c0_1, %c0_2] : memref<16x32xbf16, #tpu.memory_space<vmem>>, vector<16x32xbf16>
    %cst = arith.constant dense<0.000000e+00> : vector<16x128xf32>
    %2 = tpu.matmul %1, %0, %cst {dimension_numbers = #tpu.dot_dimension_numbers<[1], [0], [0], [1], [0, 0, 1, 1], [], []>} : vector<16x32xbf16>, vector<32x128xbf16>, vector<16x128xf32> -> vector<16x128xf32>
    %c0_3 = arith.constant 0 : index
    %c0_4 = arith.constant 0 : index
    %3 = vector.load %arg3[%c0_3, %c0_4] : memref<16x1xf32, #tpu.memory_space<vmem>>, vector<16x1xf32>
    %4 = vector.broadcast %3 : vector<16x1xf32> to vector<16x128xf32>
    %5 = arith.addf %2, %4 : vector<16x128xf32>
    %cst_5 = arith.constant 0.000000e+00 : f32
    %6 = vector.broadcast %cst_5 : f32 to vector<16x128xf32>
    %7 = arith.maximumf %5, %6 : vector<16x128xf32>
    %c0_6 = arith.constant 0 : index
    %c0_7 = arith.constant 0 : index
    %8 = vector.load %arg4[%c0_6, %c0_7] : memref<8x16xbf16, #tpu.memory_space<vmem>>, vector<8x16xbf16>
    %9 = arith.truncf %7 : vector<16x128xf32> to vector<16x128xbf16>
    %cst_8 = arith.constant dense<0.000000e+00> : vector<8x128xf32>
    %10 = tpu.matmul %8, %9, %cst_8 {dimension_numbers = #tpu.dot_dimension_numbers<[1], [0], [0], [1], [0, 0, 1, 1], [], []>} : vector<8x16xbf16>, vector<16x128xbf16>, vector<8x128xf32> -> vector<8x128xf32>
    %c0_9 = arith.constant 0 : index
    %c0_10 = arith.constant 0 : index
    %11 = vector.load %arg5[%c0_9, %c0_10] : memref<8x1xf32, #tpu.memory_space<vmem>>, vector<8x1xf32>
    %12 = vector.broadcast %11 : vector<8x1xf32> to vector<8x128xf32>
    %13 = arith.addf %10, %12 : vector<8x128xf32>
    %cst_11 = arith.constant 0.000000e+00 : f32
    %14 = vector.broadcast %cst_11 : f32 to vector<8x128xf32>
    %15 = arith.maximumf %13, %14 : vector<8x128xf32>
    %c0_12 = arith.constant 0 : index
    %c0_13 = arith.constant 0 : index
    %16 = vector.load %arg6[%c0_12, %c0_13] : memref<4x8xbf16, #tpu.memory_space<vmem>>, vector<4x8xbf16>
    %17 = arith.truncf %15 : vector<8x128xf32> to vector<8x128xbf16>
    %cst_14 = arith.constant dense<0.000000e+00> : vector<4x128xf32>
    %18 = tpu.matmul %16, %17, %cst_14 {dimension_numbers = #tpu.dot_dimension_numbers<[1], [0], [0], [1], [0, 0, 1, 1], [], []>} : vector<4x8xbf16>, vector<8x128xbf16>, vector<4x128xf32> -> vector<4x128xf32>
    %c0_15 = arith.constant 0 : index
    %c0_16 = arith.constant 0 : index
    %19 = vector.load %arg7[%c0_15, %c0_16] : memref<4x1xf32, #tpu.memory_space<vmem>>, vector<4x1xf32>
    %20 = vector.broadcast %19 : vector<4x1xf32> to vector<4x128xf32>
    %21 = arith.addf %18, %20 : vector<4x128xf32>
    %c0_17 = arith.constant 0 : index
    %c0_18 = arith.constant 0 : index
    %22 = vector.load %arg8[%c0_17, %c0_18] : memref<4x128xf32, #tpu.memory_space<vmem>>, vector<4x128xf32>
    tpu.vector_store %arg8[%c0_17, %c0_18], %21 {strides = array<i32>} : memref<4x128xf32, #tpu.memory_space<vmem>>, vector<4x128xf32>,
    return
  }
  func.func @transform_0(%arg0: i32) -> (i32, i32) {
    %c0_i32 = arith.constant 0 : i32
    %c0_i32_0 = arith.constant 0 : i32
    return %c0_i32, %arg0 : i32, i32
  }
  func.func @transform_1(%arg0: i32) -> (i32, i32) {
    %c0_i32 = arith.constant 0 : i32
    %c0_i32_0 = arith.constant 0 : i32
    %c0_i32_1 = arith.constant 0 : i32
    return %c0_i32, %c0_i32_0 : i32, i32
  }
  func.func @transform_2(%arg0: i32) -> (i32, i32) {
    %c0_i32 = arith.constant 0 : i32
    %c0_i32_0 = arith.constant 0 : i32
    %c0_i32_1 = arith.constant 0 : i32
    return %c0_i32, %c0_i32_0 : i32, i32
  }
  func.func @transform_3(%arg0: i32) -> (i32, i32) {
    %c0_i32 = arith.constant 0 : i32
    %c0_i32_0 = arith.constant 0 : i32
    %c0_i32_1 = arith.constant 0 : i32
    return %c0_i32, %c0_i32_0 : i32, i32
  }
  func.func @transform_4(%arg0: i32) -> (i32, i32) {
    %c0_i32 = arith.constant 0 : i32
    %c0_i32_0 = arith.constant 0 : i32
    %c0_i32_1 = arith.constant 0 : i32
    return %c0_i32, %c0_i32_0 : i32, i32
  }
  func.func @transform_5(%arg0: i32) -> (i32, i32) {
    %c0_i32 = arith.constant 0 : i32
    %c0_i32_0 = arith.constant 0 : i32
    %c0_i32_1 = arith.constant 0 : i32
    return %c0_i32, %c0_i32_0 : i32, i32
  }
  func.func @transform_6(%arg0: i32) -> (i32, i32) {
    %c0_i32 = arith.constant 0 : i32
    %c0_i32_0 = arith.constant 0 : i32
    %c0_i32_1 = arith.constant 0 : i32
    return %c0_i32, %c0_i32_0 : i32, i32
  }
  func.func @transform_7(%arg0: i32) -> (i32, i32) {
    %c0_i32 = arith.constant 0 : i32
    %c0_i32_0 = arith.constant 0 : i32
    return %c0_i32, %arg0 : i32, i32
  }
}

</mosaic_0001>

<bundles_post_ra>
// kernel: five_o_classifier.1
= control target key start
LH: loop header
LB: loop body
LE: loop exit
PB: predicated region body
PF: predicated region fallthrough
CT: control target
= control target key end

     0   :  { %12 = vsyncpa [#allocation4], 0  ;;  %s936_s0 = inlined_call_operand.vmem [shape: bf16[32,256], index: 0, kind: input, shape index: {}]   ;;  %s937_s1 = inlined_call_operand.vmem [shape: bf16[16,32], index: 1, kind: input, shape index: {}]   ;;  %s938_s2 = inlined_call_operand.vmem [shape: f32[16,1], index: 2, kind: input, shape index: {}]   ;;  %s939_s3 = inlined_call_operand.vmem [shape: bf16[8,16], index: 3, kind: input, shape index: {}]   ;;  %s940_s4 = inlined_call_operand.vmem [shape: f32[8,1], index: 4, kind: input, shape index: {}]   ;;  %s941_s5 = inlined_call_operand.vmem [shape: bf16[4,8], index: 5, kind: input, shape index: {}]   ;;  %s942_s6 = inlined_call_operand.vmem [shape: f32[4,1], index: 6, kind: input, shape index: {}]   ;;  %s943_s7 = inlined_call_operand.hbm [shape: f32[4,256], index: 7, kind: output, shape index: {}]  }
   0x1   :  { %14 = vsyncpa [#allocation4 + $0x1], 0  ;;  %s802_s24 = smov 0   ;;  %s804_s25 = smov 0  }
   0x2   :  { %s806_s26 = smov 0   ;;  %s808_s27 = smov 0  }
   0x3 LB: > { %s601_s28 = sadd.s32 4294967295, %s756_s27   ;;  %s602_s29 = sadd.s32 4294967294, %s756_s27   ;;  %s756_s27 = sphi %s808_s27, %s949_s27   ;;  %s752_s26 = sphi %s806_s26, %s948_s26   ;;  %s748_s25 = sphi %s804_s25, %s947_s25   ;;  %s744_s24 = sphi %s802_s24, %s946_s24  }
   0x4   : > { %s825_s30 = sadd.s32 1, %s756_s27   ;;  %s27_s8 = sadd.s32 1, %s752_s26 }
   0x5   : > { %s24_s9 = ssub.s32 %s756_s27, %s825_s30  ;;  %p34_p0 = scmp.ne.s32.totalorder %s752_s26, %s748_s25 }
   0x6   : > { %p25_p1 = scmp.eq.s32.totalorder %s24_s9, 0  ;;  %p35_p2 = scmp.eq.s32.totalorder %s756_s27, 0 }
   0x7   : > { %p190_p3 = scmp.eq.s32.totalorder %s601_s28, 1  ;;  %p195_p4 = scmp.ne.s32.totalorder %s748_s25, %s744_s24 }
   0x8   : > { %s838_s10 = scalar_select %p25_p1, %s752_s26, %s27_s8  }
   0x9   : > { %p36_p5 = por %p35_p2, %p34_p0  ;;  %p840_p6 = por %p190_p3, %p34_p0 }
   0xa   : > { %p196_p7 = scmp.eq.s32.totalorder %s602_s29, 1  ;;  %p604_p9 = scmp.ge.s32.totalorder %s756_s27, 2 }
   0xc   : > { %p844_p8 = por %p196_p7, %p195_p4  ;;  %230 = sbr.rel (%p604_p9) target bundleno = 26 (0x1a), region = 40 }
  0x13   : > { %233 = sbr.rel (!%p36_p5) target bundleno = 26 (0x1a), region = 44  ;;  %s235_s13 = sand.u32 (%p36_p5), 1, %s752_s26  }
  0x14   : > { %s606_s14 = sshll.u32 (%p36_p5), %s756_s27, 2  ;;  %s605_s15 = sshll.u32 (%p36_p5), %s235_s13, 4 }
  0x15   : > { %s239_s18 = scalar_lea.vmem (%p36_p5), %s936_s0, %s606_s14  ;;  %s237_s19 = scalar_lea.vmem (%p36_p5), [#allocation2], %s605_s15 }
  0x16   : > { %v255_v0 = vld [vmem:[%s239_s18] sm:$0xf] (%p36_p5)  ;;  %v257_v1 = vld [vmem:[%s239_s18 + $0x8] sm:$0xf] (%p36_p5)  ;;  %v259_v2 = vld [vmem:[%s239_s18 + $0x10] sm:$0xf] (%p36_p5) }
  0x17   : > { %256 = vst [vmem:[%s237_s19] sm:$0xf] (%p36_p5), %v255_v0  ;;  %258 = vst [vmem:[%s237_s19 + $0x4] sm:$0xf] (%p36_p5), %v257_v1  ;;  %v261_v3 = vld [vmem:[%s239_s18 + $0x18] sm:$0xf] (%p36_p5) }
  0x18   : > { %260 = vst [vmem:[%s237_s19 + $0x8] sm:$0xf] (%p36_p5), %v259_v2  ;;  %262 = vst [vmem:[%s237_s19 + $0xc] sm:$0xf] (%p36_p5), %v261_v3 }
  0x1a PF: > { %p607_p10 = scmp.ge.s32.totalorder %s756_s27, 1  ;;  %p292_p11 = scmp.lt.s32.totalorder %s756_s27, 3 }
  0x1c   : > { %p293_p12 = pnand %p607_p10, %p292_p11 }
  0x1d   : > { %s859_s20 = sand.u32 (!%p293_p12), 1, %s748_s25   ;;  %v758_v4 = vmov (!%p293_p12), 0.0   ;;  %vm759_vm0 = vmmov (!%p293_p12), 0   ;;  %v337_v5 = vld [vmem:[%s938_s2] sm:$0xff] (!%p293_p12)  ;;  %v760_v6 = vmov (!%p293_p12), 0   ;;  %v338_v8 = vld [vmem:[%s938_s2 + $0x8] sm:$0xff] (!%p293_p12) }
  0x1e   : > { %296 = sbr.rel (%p293_p12) target bundleno = 713 (0x2c9), region = 85  ;;  %627 = vmatprep.subr.bf16.mxu0 (!%p293_p12), %v758_v4  ;;  %s608_s21 = sshll.u32 (!%p293_p12), %s859_s20, 4  ;;  %631 = vmatprep.mubr.msk.bf16.mxu0 (!%p293_p12), %vm759_vm0, %v758_v4  ;;  %v693_v10 = vld [vmem:[%s937_s1] sm:$0xff] (!%p293_p12)   ;;  %vm366_vm1 = vcmask (!%p293_p12), 261120   ;;  %vm421_vm2 = vcmask (!%p293_p12), 130048   ;;  %vm478_vm3 = vcmask (!%p293_p12), 1043456  }
  0x1f   : > { %689 = vset.pattern.permute.xlu0 (!%p293_p12), %v760_v6  ;;  %635 = vmatprep.subr.bf16.mxu1 (!%p293_p12), %v758_v4  ;;  %s301_s29 = scalar_lea.vmem (!%p293_p12), [#allocation2], %s608_s21  ;;  %v415_v11 = vld [vmem:[%s940_s4] sm:$0xff] (!%p293_p12)  ;;  %vm474_vm4 = vcmask (!%p293_p12), 64512   ;;  %s617_s8 = sshll.u32 (!%p293_p12), %s601_s28, 6 }
  0x20   : > { %v691_v7 = vld [vmem:[%s301_s29] sm:$0xff] (!%p293_p12)   ;;  %341 = vperm.xlu0 (!%p293_p12), %689, %v337_v5   ;;  %637 = vmatprep.mubr.msk.bf16.mxu1 (!%p293_p12), %vm759_vm0, %v758_v4  ;;  %v692_v9 = vld [vmem:[%s301_s29 + $0x8] sm:$0xff] (!%p293_p12)   ;;  %s609_s29 = sshll.u32 (!%p293_p12), %s859_s20, 2  ;;  %s892_s16 = scalar_lea.hbm (!%p293_p12), %s943_s7, %s617_s8 }
  0x21   : > { %690 = vset.pattern.permute.xlu1 (!%p293_p12), %v760_v6  ;;  %628 = vmatpush3.bf16.msra.mxu0 (!%p293_p12), %v691_v7  ;;  %v468_v12 = vld [vmem:[%s942_s6] sm:$0xf] (!%p293_p12)  ;;  %s329_s9 = scalar_lea.vmem (!%p293_p12), [#allocation3], %s609_s29  ;;  %s524_s28 = scalar_lea.sflag (!%p293_p12), [#allocation4], %s859_s20 }
  0x22   : > { %629 = vmatprep.subr.bf16.mxu0 (!%p293_p12), %v758_v4  ;;  %418 = vperm.xlu1 (!%p293_p12), %690, %v415_v11   ;;  %v413_v24 = vld [vmem:[%s939_s3] sm:$0xf] (!%p293_p12)  ;;  %s537_s13 = sshll.u32 (!%p293_p12), %s329_s9, 4  ;;  %s761_s18 = smov (!%p293_p12), [#allocation3]   ;;  %s894_s13 = int_to_ptr.vmem [resolvable:$true] %s537_s13 }
  0x23   : > { %v466_v34 = vld [vmem:[%s941_s5] sm:$0x3] (!%p293_p12)  ;;  %s694_s17 = scalar_lea.vmem (!%p293_p12), %s894_s13, 64  ;;  %s698_s19 = sshll.u32 (!%p293_p12), %s761_s18, 4  ;;  %s699_s19 = int_to_ptr.vmem [resolvable:$false] %s698_s19 }
  0x24   : > { %346 = vperm.xlu0 (!%p293_p12), %689, %v338_v8   ;;  %p695_p13 = scmp.ne.s32.totalorder (!%p293_p12), %s894_s13, %s694_s17  ;;  %s700_s21 = scalar_lea.vmem (!%p293_p12), %s699_s19, 128 }
  0x25   : > { %630 = vmatpush3.bf16.msra.mxu0 %v692_v9  ;;  %p701_p2 = scmp.lt.s32.totalorder %s894_s13, %s699_s19  ;;  %p702_p3 = scmp.lt.s32.totalorder %s700_s21, %s694_s17 }
  0x26   : > { %471 = vperm.xlu1 %690, %v468_v12   ;;  %p696_p0 = pnand %p695_p13, %p840_p6 }
  0x27   : > { %p703_p4 = por %p702_p3, %p701_p2 }
  0x28   : > { %632 = vmatmul.mubr.msk.bf16.vlgmr.msra.gmra.mrb[0].mxu0 %vm366_vm1, %v693_v10  ;;  %p697_p1 = pneg %p696_p0 }
  0x2a   : > { %p704_p5 = pnand %p703_p4, %p697_p1 }
  0x9f   : > { %v342_v13 = vpop.permute.xlu0 %341 }
  0xa1   : > { %v419_v25 = vpop.permute.xlu1 %418 }
  0xa3   : > { %v347_v17 = vpop.permute.xlu0 %346 }
  0xa5   : > { %v472_v35 = vpop.permute.xlu1 %471 }
  0xfb   : > { %v404_v14 = vpop.f32.mrb[0].mxu0 }
  0xfc   : > { %v405_v15 = vadd.f32 %v404_v14, %v342_v13  ;;  %v633_v16 = vpop.f32.mrb[1].mxu0 }
  0xfd   : > { %v407_v18 = vpop.f32.mrb[2].mxu0 }
  0xfe   : > { %v408_v19 = vadd.f32 %v407_v18, %v347_v17  ;;  %v634_v20 = vpop.f32.mrb[3].mxu0  ;;  %v411_v21 = vmax.f32 %v405_v15, 0.0 }
 0x100   : > { %v412_v22 = vmax.f32 %v408_v19, 0.0 }
 0x102   : > { %v414_v23 = vpack.c.bf16 %v412_v22, %v411_v21 }
 0x104   : > { %636 = vmatpush3.bf16.msra.mxu1 %v414_v23 }
 0x105   : > { %641 = vmatprep.subr.bf16.mxu1 %v758_v4 }
 0x107   : > { %638 = vmatmul.mubr.msk.bf16.vlgmr.msra.gmra.mrb[0].mxu1 %vm421_vm2, %v413_v24 }
 0x108   : > { %643 = vmatprep.mubr.msk.bf16.mxu1 %vm759_vm0, %v758_v4 }
 0x1da   : > { %v459_v26 = vpop.f32.mrb[0].mxu1 }
 0x1db   : > { %v460_v27 = vadd.f32 %v459_v26, %v419_v25  ;;  %v639_v28 = vpop.f32.mrb[1].mxu1 }
 0x1dc   : > { %v462_v29 = vpop.f32.mrb[2].mxu1 }
 0x1dd   : > { %v465_v30 = vmax.f32 %v460_v27, 0.0  ;;  %v640_v31 = vpop.f32.mrb[3].mxu1 }
 0x1df   : > { %v467_v32 = vpack.c.bf16 %v465_v30, %v465_v30 }
 0x1e1   : > { %v480_v33 = vsel %vm478_vm3, %v467_v32, 0 }
 0x1e2   : > { %642 = vmatpush3.bf16.msra.mxu1 %v480_v33 }
 0x1e5   : > { %644 = vmatmul.mubr.msk.bf16.vlgmr.msra.gmra.mrb[4].mxu1 %vm474_vm4, %v466_v34 }
 0x2b8   : > { %v516_v36 = vpop.f32.mrb[4].mxu1 }
 0x2b9   : > { %v517_v37 = vadd.f32 %v516_v36, %v472_v35  ;;  %v645_v38 = vpop.f32.mrb[5].mxu1 }
 0x2ba   : > { %v519_v39 = vpop.f32.mrb[6].mxu1 }
 0x2bb   : > { %522 = vst [vmem:[%s329_s9] sm:$0xf] %v517_v37  ;;  %v646_v40 = vpop.f32.mrb[7].mxu1 }
 0x2bc   : > { %707 = shalt.err (!%p704_p5)
}
 0x2bd   : > { %s708_s20 = scalar_lea.hbm %s892_s16, 64  ;;  %s712_s29 = scalar_lea.hbm %s943_s7, 128 }
 0x2be   : > { %p709_p7 = scmp.ne.s32.totalorder %s892_s16, %s708_s20  ;;  %p713_p12 = scmp.lt.u32.totalorder %s892_s16, %s943_s7 }
 0x2bf   : > { %p714_p13 = scmp.lt.u32.totalorder %s712_s29, %s708_s20  ;;  %p716_p1 = scmp.lt.u32.totalorder %s708_s20, %s892_s16 }
 0x2c0   : > { %p710_p10 = pnand %p709_p7, %p840_p6 }
 0x2c1   : > { %p715_p0 = por %p714_p13, %p713_p12 }
 0x2c2   : > { %p711_p11 = pneg %p710_p10 }
 0x2c3   : > { %p717_p2 = por %p716_p1, %p715_p0 }
 0x2c5   : > { %p718_p3 = pnand %p717_p2, %p711_p11 }
 0x2c7   : > { %721 = shalt.err (!%p718_p3)
}
 0x2c8   : > { %647 = dma.vmem_to_hbm [thread:$0]  (%p840_p6), %s894_s13, 64, %s892_s16, %s524_s28  }
 0x2c9 PF: > { %s549_s14 = sand.u32 1, %s744_s24   ;;  %p650_p4 = pnand %p604_p9, %p844_p8 }
 0x2ca   : > { %s550_s15 = scalar_lea.sflag [#allocation4], %s549_s14 }
 0x2cb   : > { %739 = dma.done.wait (!%p650_p4), %s550_s15, 64  }
 0x2cc   : > { %741 = vsyncadd (!%p650_p4), %s550_s15, 4294967232  ;;  %p17_p5 = scmp.ge.s32.totalorder %s825_s30, 4   ;;  %s946_s24 = smov %s748_s25 }
 0x2cd   : > { %s947_s25 = smov %s752_s26  ;;  %s948_s26 = smov %s838_s10 }
 0x2ce   : > { %s949_s27 = smov %s825_s30  ;;  %19 = sbr.rel (!%p17_p5) target bundleno = 3 (0x3), region = 129 }
 0x2d5   :  { %555 = vsyncpa [#allocation4], 1 }
 0x2d6   :  { %557 = vsyncpa [#allocation4 + $0x1], 1 }

</bundles_post_ra>
